<compile_context>
chip_gen: v6e
topology: v6e:2x2x1
jax: 0.10.0
libtpu: 0.0.40
codegen_flags: <defaults>
</compile_context>

<pallas_src>
import jax
import jax.numpy as jnp
from jax.experimental import pallas as pl
from jax.experimental.pallas import tpu as pltpu


# Cap on the double-buffered per-step working set (inputs + outputs).
# Comfortable on v5e/v6e (128 MiB VMEM) and safe on v7x (64 MiB physical).
_VMEM_STEP_BUDGET = 20 * 1024 * 1024


# ----------------------------- Pallas kernel -------------------------------

def _output_head_kernel(x_ref, w_ref, b_ref, score_ref, quad_ref):
    """x_ref: (Nb, Cin, TW); w_ref: (16, Cin); b_ref: (16, 1) f32.

    Fused weight slab: rows 0..7 = quad head, row 8 = score head, rows 9..15
    are zero padding, so both row slices below sit on 8-sublane tile
    boundaries (no cross-tile shuffles).
    """
    w = w_ref[...]
    b = b_ref[...]
    for i in range(x_ref.shape[0]):        # Nb is a small compile-time constant
        y = jnp.dot(w, x_ref[i], preferred_element_type=jnp.float32) + b  # (16, TW)
        quad_ref[i] = y[0:8, :].astype(quad_ref.dtype)         # quad: NO sigmoid
        score_ref[i] = jax.nn.sigmoid(y[8:9, :]).astype(score_ref.dtype)


# --------------------------- tiling heuristics ------------------------------

def _largest_128_divisor(hw, cap):
    """Largest multiple of 128 that divides hw and is <= cap (0 if none)."""
    best = 0
    m = 128
    limit = min(hw, cap)
    while m <= limit:
        if hw % m == 0:
            best = m
        m += 128
    return best


def _choose_spatial_tile(hw, max_cols, prefer_splits):
    """Pick (TW, n_t). max_cols = spatial columns allowed by the VMEM budget."""
    cap = min(hw, max_cols)
    if prefer_splits and hw >= 256:
        # Single-image case: split the spatial axis so v7x's 2nd core has work.
        cap = min(cap, hw // 2)
    tw = _largest_128_divisor(hw, cap)
    if tw:
        return tw, hw // tw
    if hw <= cap:
        return hw, 1                         # full-extent block (always legal)
    # No lane-aligned divisor fits the budget: ragged last tile (Pallas masks it).
    tw = max(128, (cap // 128) * 128)
    return tw, pl.cdiv(hw, tw)


def _choose_batch_block(n, tw, n_t, max_cols):
    """Block several images per grid step when the whole map fits one tile."""
    if n_t > 1 or n <= 1:
        return 1
    best = 1
    for nb in range(1, min(n, 16) + 1):
        if n % nb:
            continue
        if nb * tw > max_cols:
            break
        if n // nb < 2:          # keep >= 2 grid steps so both v7x cores stream
            break
        best = nb
    return best


# ------------------------------- wrapper ------------------------------------

def output_forward(x_nchw, params):
    """Output.forward: x (N, 32, H, W) NCHW -> (score (N,1,H,W), quad (N,8,H,W))."""
    w_score, b_score, w_quad, b_quad = params
    N, C, H, W = x_nchw.shape
    HW = H * W

    # Consume bf16 activations directly (no extra HBM pass); otherwise f32.
    if x_nchw.dtype == jnp.bfloat16:
        mm_dtype = jnp.bfloat16
        x = x_nchw.reshape(N, C, HW)
    else:
        mm_dtype = jnp.float32
        x = x_nchw.reshape(N, C, HW).astype(jnp.float32)
    out_dtype = x.dtype

    in_b = jnp.dtype(mm_dtype).itemsize
    out_b = jnp.dtype(out_dtype).itemsize
    per_col_bytes = C * in_b + 9 * out_b            # input + (score+quad) per column
    max_cols = max(128, _VMEM_STEP_BUDGET // (2 * per_col_bytes))  # 2x = double buffer

    TW, n_t = _choose_spatial_tile(HW, max_cols, prefer_splits=(N == 1))
    Nb = _choose_batch_block(N, TW, n_t, max_cols)
    n_groups = N // Nb

    # Fuse both 1x1-conv heads into one (16, Cin) weight slab + (16, 1) f32 bias.
    w_all = jnp.concatenate(
        [w_quad.reshape(8, C), w_score.reshape(1, C),
         jnp.zeros((7, C), w_quad.dtype)], axis=0).astype(mm_dtype)      # (16, C)
    b_all = jnp.concatenate(
        [b_quad.reshape(8), b_score.reshape(1),
         jnp.zeros((7,), b_quad.dtype)]).astype(jnp.float32).reshape(16, 1)

    score2, quad2 = pl.pallas_call(
        _output_head_kernel,
        out_shape=(jax.ShapeDtypeStruct((N, 1, HW), out_dtype),
                   jax.ShapeDtypeStruct((N, 8, HW), out_dtype)),
        grid=(n_groups, n_t),                       # spatial axis fastest-varying
        in_specs=[
            pl.BlockSpec((Nb, C, TW), lambda n, t: (n, 0, t)),   # activations
            pl.BlockSpec((16, C), lambda n, t: (0, 0)),          # fused weights
            pl.BlockSpec((16, 1), lambda n, t: (0, 0)),          # fused bias
        ],
        out_specs=(
            pl.BlockSpec((Nb, 1, TW), lambda n, t: (n, 0, t)),   # score
            pl.BlockSpec((Nb, 8, TW), lambda n, t: (n, 0, t)),   # quad
        ),
        compiler_params=pltpu.CompilerParams(
            dimension_semantics=("parallel", "parallel"),
            vmem_limit_bytes=40 * 1024 * 1024),
    )(x, w_all, b_all)

    return score2.reshape(N, 1, H, W), quad2.reshape(N, 8, H, W)


# ------------------------------ reference -----------------------------------

def _reference_forward(x, params):
    w_score, b_score, w_quad, b_quad = params
    score = jnp.einsum('nchw,oc->nohw', x, w_score.reshape(1, -1),
                       precision=jax.lax.Precision.HIGHEST) \
        + b_score.reshape(1, 1, 1, 1)
    score = jax.nn.sigmoid(score)
    quad = jnp.einsum('nchw,oc->nohw', x, w_quad.reshape(8, -1),
                      precision=jax.lax.Precision.HIGHEST) \
        + b_quad.reshape(1, 8, 1, 1)
    return score, quad   # NOTE: quad has no sigmoid (matches PyTorch forward)


# --------------------------------- main --------------------------------------

if __name__ == "__main__":
    def run_case(key, N, H, W):
        C = 32
        kx, kw1, kb1, kw2, kb2 = jax.random.split(key, 5)
        x = jax.random.normal(kx, (N, C, H, W), jnp.float32)
        w_score = jax.random.normal(kw1, (1, C, 1, 1), jnp.float32) / jnp.sqrt(C)
        b_score = 0.1 * jax.random.normal(kb1, (1,), jnp.float32)
        w_quad = jax.random.normal(kw2, (8, C, 1, 1), jnp.float32) / jnp.sqrt(C)
        b_quad = 0.1 * jax.random.normal(kb2, (8,), jnp.float32)
        params = (w_score, b_score, w_quad, b_quad)

        score, quad = jax.block_until_ready(jax.jit(output_forward)(x, params))
        assert score.shape == (N, 1, H, W), score.shape
        assert quad.shape == (N, 8, H, W), quad.shape
        assert bool(jnp.all(jnp.isfinite(score))) and bool(jnp.all(jnp.isfinite(quad)))

        ref_score, ref_quad = _reference_forward(x, params)
        for got, ref in ((score, ref_score), (quad, ref_quad)):
            err = float(jnp.max(jnp.abs(got - ref)))
            denom = float(jnp.max(jnp.abs(ref))) + 1e-6
            assert err / denom < 1e-3, (err, denom)

    key = jax.random.PRNGKey(0)
    k1, k2 = jax.random.split(key)
    run_case(k1, N=2, H=16, W=16)   # one image per step, lane-aligned tile
    run_case(k2, N=4, H=24, W=20)   # multi-image-per-step (Nb=2), full-extent tile
    print("KERNEL_OK")
</pallas_src>

<mosaic_0001>
module attributes {stable_mosaic.version = 11 : i64} {
  func.func @_output_head_kernel(%arg0: i32, %arg1: i32, %arg2: memref<1x32x256xf32, #tpu.memory_space<vmem>>, %arg3: memref<16x32xf32, #tpu.memory_space<vmem>>, %arg4: memref<16x1xf32, #tpu.memory_space<vmem>>, %arg5: memref<1x1x256xf32, #tpu.memory_space<vmem>>, %arg6: memref<1x8x256xf32, #tpu.memory_space<vmem>>) attributes {dimension_semantics = [#tpu.dimension_semantics<parallel>, #tpu.dimension_semantics<parallel>], iteration_bounds = array<i64: 2, 1>, scalar_prefetch = 0 : i64, scratch_operands = 0 : i64, tpu.core_type = #tpu.core_type<tc>, window_params = [{transform_indices = @transform_0, window_bounds = array<i64: 1, 32, 256>}, {pipeline_mode = #tpu.pipeline_mode<synchronous>, transform_indices = @transform_1, window_bounds = array<i64: 16, 32>}, {pipeline_mode = #tpu.pipeline_mode<synchronous>, transform_indices = @transform_2, window_bounds = array<i64: 16, 1>}, {transform_indices = @transform_3, window_bounds = array<i64: 1, 1, 256>}, {transform_indices = @transform_4, window_bounds = array<i64: 1, 8, 256>}]} {
    %c0 = arith.constant 0 : index
    %c0_0 = arith.constant 0 : index
    %0 = vector.load %arg3[%c0, %c0_0] : memref<16x32xf32, #tpu.memory_space<vmem>>, vector<16x32xf32>
    %c0_1 = arith.constant 0 : index
    %c0_2 = arith.constant 0 : index
    %1 = vector.load %arg4[%c0_1, %c0_2] : memref<16x1xf32, #tpu.memory_space<vmem>>, vector<16x1xf32>
    %c0_3 = arith.constant 0 : index
    %c0_4 = arith.constant 0 : index
    %c0_5 = arith.constant 0 : index
    %2 = vector.load %arg2[%c0_3, %c0_4, %c0_5] : memref<1x32x256xf32, #tpu.memory_space<vmem>>, vector<1x32x256xf32>
    %3 = vector.shape_cast %2 : vector<1x32x256xf32> to vector<32x256xf32>
    %cst = arith.constant dense<0.000000e+00> : vector<16x256xf32>
    %4 = tpu.matmul %0, %3, %cst {dimension_numbers = #tpu.dot_dimension_numbers<[1], [0], [0], [1], [0, 0, 1, 1], [], []>} : vector<16x32xf32>, vector<32x256xf32>, vector<16x256xf32> -> vector<16x256xf32>
    %5 = vector.broadcast %1 : vector<16x1xf32> to vector<16x256xf32>
    %6 = arith.addf %4, %5 : vector<16x256xf32>
    %7 = vector.extract_strided_slice %6 {offsets = [0, 0], sizes = [8, 256], strides = [1, 1]} : vector<16x256xf32> to vector<8x256xf32>
    %c0_6 = arith.constant 0 : index
    %c0_7 = arith.constant 0 : index
    %c0_8 = arith.constant 0 : index
    %8 = vector.load %arg6[%c0_6, %c0_7, %c0_8] : memref<1x8x256xf32, #tpu.memory_space<vmem>>, vector<1x8x256xf32>
    %9 = vector.shape_cast %8 : vector<1x8x256xf32> to vector<8x256xf32>
    %10 = vector.shape_cast %7 : vector<8x256xf32> to vector<1x8x256xf32>
    tpu.vector_store %arg6[%c0_6, %c0_7, %c0_8], %10 {strides = array<i32>} : memref<1x8x256xf32, #tpu.memory_space<vmem>>, vector<1x8x256xf32>,
    %11 = vector.extract_strided_slice %6 {offsets = [8, 0], sizes = [1, 256], strides = [1, 1]} : vector<16x256xf32> to vector<1x256xf32>
    %12 = arith.negf %11 : vector<1x256xf32>
    %13 = math.exp %12 : vector<1x256xf32>
    %cst_9 = arith.constant 1.000000e+00 : f32
    %14 = vector.broadcast %cst_9 : f32 to vector<1x256xf32>
    %15 = arith.addf %14, %13 : vector<1x256xf32>
    %16 = arith.divf %14, %15 : vector<1x256xf32>
    %c0_10 = arith.constant 0 : index
    %c0_11 = arith.constant 0 : index
    %c0_12 = arith.constant 0 : index
    %17 = vector.load %arg5[%c0_10, %c0_11, %c0_12] : memref<1x1x256xf32, #tpu.memory_space<vmem>>, vector<1x1x256xf32>
    %18 = vector.shape_cast %17 : vector<1x1x256xf32> to vector<1x256xf32>
    %19 = vector.shape_cast %16 : vector<1x256xf32> to vector<1x1x256xf32>
    tpu.vector_store %arg5[%c0_10, %c0_11, %c0_12], %19 {strides = array<i32>} : memref<1x1x256xf32, #tpu.memory_space<vmem>>, vector<1x1x256xf32>,
    return
  }
  func.func @transform_0(%arg0: i32, %arg1: i32) -> (i32, i32, i32) {
    %c0_i32 = arith.constant 0 : i32
    %c0_i32_0 = arith.constant 0 : i32
    return %arg0, %c0_i32, %arg1 : i32, i32, i32
  }
  func.func @transform_1(%arg0: i32, %arg1: i32) -> (i32, i32) {
    %c0_i32 = arith.constant 0 : i32
    %c0_i32_0 = arith.constant 0 : i32
    %c0_i32_1 = arith.constant 0 : i32
    return %c0_i32, %c0_i32_0 : i32, i32
  }
  func.func @transform_2(%arg0: i32, %arg1: i32) -> (i32, i32) {
    %c0_i32 = arith.constant 0 : i32
    %c0_i32_0 = arith.constant 0 : i32
    %c0_i32_1 = arith.constant 0 : i32
    return %c0_i32, %c0_i32_0 : i32, i32
  }
  func.func @transform_3(%arg0: i32, %arg1: i32) -> (i32, i32, i32) {
    %c0_i32 = arith.constant 0 : i32
    %c0_i32_0 = arith.constant 0 : i32
    return %arg0, %c0_i32, %arg1 : i32, i32, i32
  }
  func.func @transform_4(%arg0: i32, %arg1: i32) -> (i32, i32, i32) {
    %c0_i32 = arith.constant 0 : i32
    %c0_i32_0 = arith.constant 0 : i32
    return %arg0, %c0_i32, %arg1 : i32, i32, i32
  }
}

</mosaic_0001>

<bundles_post_ra>
// kernel: output_forward.1
= control target key start
LH: loop header
LB: loop body
LE: loop exit
PB: predicated region body
PF: predicated region fallthrough
CT: control target
= control target key end

     0   :  { %s647_s15 = smov 0   ;;  %s649_s16 = smov 0   ;;  %s700_s0 = inlined_call_operand.vmem [shape: f32[2,32,256], index: 0, kind: input, shape index: {}]   ;;  %s701_s1 = inlined_call_operand.vmem [shape: f32[16,32], index: 1, kind: input, shape index: {}]   ;;  %s702_s2 = inlined_call_operand.vmem [shape: f32[16,1], index: 2, kind: input, shape index: {}]   ;;  %s703_s3 = inlined_call_operand.vmem [shape: f32[2,1,256], index: 3, kind: output, shape index: {0}]   ;;  %s704_s4 = inlined_call_operand.vmem [shape: f32[2,8,256], index: 4, kind: output, shape index: {1}]  }
   0x1   :  { %s651_s17 = smov 0  }
   0x2 LB: > { %s27_s18 = sadd.s32 1, %s613_s16  ;;  %p537_p0 = scmp.ge.s32.totalorder %s617_s17, 1  ;;  %s617_s17 = sphi %s651_s17, %s15_s17   ;;  %s613_s16 = sphi %s649_s16, %s706_s16   ;;  %s609_s15 = sphi %s647_s15, %s705_s15  }
   0x3   : > { %p29_p1 = scmp.ge.s32.totalorder %s27_s18, 2  ;;  %p188_p2 = scmp.lt.s32.totalorder %s617_s17, 3 }
   0x5   : > { %s708_s18 = smov (%p29_p1, %s27_s18), 0  ;;  %p189_p3 = pnand %p537_p0, %p188_p2 }
   0x6   : > { %p231_p4 = scmp.lt.s32.totalorder (!%p189_p3), %s609_s15, 1 }
   0x7   : > { %192 = sbr.rel (%p189_p3) target bundleno = 260 (0x104), region = 32 }
   0xc   : > { %v619_v0 = vmov 0.0   ;;  %v262_v1 = vld [vmem:[%s702_s2 + $0x8] sm:$0xff]  ;;  %s710_s15 = smov (!%p231_p4, %s609_s15), 1  ;;  %v620_v2 = vmov 0   ;;  %v259_v11 = vld [vmem:[%s701_s1] sm:$0xff]  ;;  %vm281_vm0 = vcmask 261120   ;;  %v385_v32 = vlaneseq }
   0xd   : > { %352 = vmatprep.mubr.f32.mxu0 %v619_v0  ;;  %358 = vmatprep.mubr.f32.mxu1 %v619_v0  ;;  %s549_s21 = sshll.u32 %s710_s15, 6  ;;  %v260_v12 = vld [vmem:[%s701_s1 + $0x8] sm:$0xff]  ;;  %v261_v13 = vld [vmem:[%s702_s2] sm:$0xff]  ;;  %s550_s5 = sshll.u32 %s710_s15, 4  ;;  %v621_v30 = vmov 1966171168  }
   0xe   : > { %586 = vset.pattern.permute.xlu0 %v620_v2  ;;  %s238_s24 = scalar_lea.vmem %s700_s0, %s549_s21  ;;  %s257_s8 = scalar_lea.vmem %s704_s4, %s550_s5  ;;  %v383_v31 = vunpack.c.l.s4 %v621_v30  ;;  %v386_v34 = vshrl.u32 %v385_v32, 7  ;;  %vm399_vm1 = vcmp.lt.s32.totalorder %v385_v32, 256 }
   0xf   : > { %278 = vperm.xlu0 %586, %v262_v1   ;;  %v270_v3 = vld [vmem:[%s238_s24 + $0x38] sm:$0xff]  ;;  %v269_v4 = vld [vmem:[%s238_s24 + $0x30] sm:$0xff]  ;;  %v268_v5 = vld [vmem:[%s238_s24 + $0x28] sm:$0xff]  ;;  %s540_s9 = sshll.u32 %s710_s15, 1 }
  0x10   : > { %312 = vmatprep.subr.mxu0 %v270_v3  ;;  %551 = vmatprep.subr.mxu1 %v270_v3  ;;  %v267_v6 = vld [vmem:[%s238_s24 + $0x20] sm:$0xff]  ;;  %v266_v7 = vld [vmem:[%s238_s24 + $0x18] sm:$0xff]  ;;  %v265_v8 = vld [vmem:[%s238_s24 + $0x10] sm:$0xff]  ;;  %v384_v33 = vunpack.c.0.s8 %v383_v31  ;;  %s247_s12 = scalar_lea.vmem %s703_s3, %s540_s9 }
  0x11   : > { %313 = vmatpush1.msra.mxu0 %v269_v4  ;;  %555 = vmatpush1.msra.mxu1 %v269_v4  ;;  %v264_v9 = vld [vmem:[%s238_s24 + $0x8] sm:$0xff]  ;;  %v263_v10 = vld [vmem:[%s238_s24] sm:$0xff] }
  0x12   : > { %314 = vmatprep.subr.mxu0 %v268_v5  ;;  %552 = vmatprep.subr.mxu1 %v268_v5  ;;  %v387_v36 = vsub.s32 %v384_v33, %v386_v34 }
  0x13   : > { %315 = vmatpush1.msra.mxu0 %v267_v6  ;;  %556 = vmatpush1.msra.mxu1 %v267_v6 }
  0x14   : > { %316 = vmatprep.subr.mxu0 %v266_v7  ;;  %553 = vmatprep.subr.mxu1 %v266_v7 }
  0x15   : > { %317 = vmatpush1.msra.mxu0 %v265_v8  ;;  %557 = vmatpush1.msra.mxu1 %v265_v8 }
  0x16   : > { %318 = vmatprep.subr.mxu0 %v264_v9  ;;  %554 = vmatprep.subr.mxu1 %v264_v9 }
  0x17   : > { %319 = vmatpush1.msra.mxu0 %v263_v10  ;;  %558 = vmatpush1.msra.mxu1 %v263_v10 }
  0x18   : > { %543 = vmatmul.mubr.msk.f32.vlgmr.msra.gmra.mxu0 %vm281_vm0, %v259_v11  ;;  %544 = vmatmul.mubr.msk.f32.vlgmr.msra.gmra.mxu1 %vm281_vm0, %v260_v12 }
  0x19   : > { %273 = vperm.xlu0 %586, %v261_v13  }
  0x8a   : > { %v279_v14 = vpop.permute.xlu0 %278 }
  0x94   : > { %v274_v15 = vpop.permute.xlu0 %273 }
  0xd8   : > { %v354_v16 = vpop.f32.mrf.mxu0  ;;  %v360_v17 = vpop.f32.mrf.mxu1 }
  0xd9   : > { %v361_v18 = vadd.f32 %v360_v17, %v279_v14  ;;  %v355_v19 = vadd.f32 %v354_v16, %v274_v15 }
  0xda   : > { %v356_v20 = vpop.f32.mrf.mxu0  ;;  %v362_v21 = vpop.f32.mrf.mxu1 }
  0xdb   : > { %v545_v22 = vmul.f32 -1.442695, %v361_v18  ;;  %365 = vst [vmem:[%s257_s8] sm:$0xff] %v355_v19  ;;  %v357_v23 = vadd.f32 %v356_v20, %v274_v15  ;;  %v363_v24 = vadd.f32 %v362_v21, %v279_v14 }
  0xdd   : > { %587 = vpow2.f32 %v545_v22  ;;  %366 = vst [vmem:[%s257_s8 + $0x8] sm:$0xff] %v357_v23  ;;  %v546_v25 = vmul.f32 -1.442695, %v363_v24 }
  0xdf   : > { %589 = vpow2.f32 %v546_v25 }
  0xea   : > { %v588_v26 = vpop.eup %587 }
  0xeb   : > { %v373_v27 = vadd.f32 1.0, %v588_v26 }
  0xec   : > { %v590_v28 = vpop.eup %589 }
  0xed   : > { %v374_v29 = vadd.f32 1.0, %v590_v28  ;;  %591 = vrcp.f32 %v373_v27 }
  0xef   : > { %593 = vrcp.f32 %v374_v29 }
  0xfa   : > { %v592_v35 = vpop.eup %591 }
  0xfc   : > { %v594_v37 = vpop.eup %593 }
  0xfd   : > { %v381_v38 = vcombine.low %v592_v35, %v594_v37 }
  0xff   : > { %v388_v39 = vrot.slane %v381_v38, %v387_v36 }
 0x101   : > { %v395_v40 = vrot.slane %v388_v39, %v387_v36 }
 0x103   : > { %401 = vst.msk [vmem:[%s247_s12] sm:$0x3] %vm399_vm1, %v395_v40 }
 0x104 PF: > { %s15_s17 = sadd.s32 1, %s617_s17   ;;  %s705_s15 = smov %s613_s16 }
 0x105   : > { %p12_p5 = scmp.ge.s32.totalorder %s15_s17, 4   ;;  %s706_s16 = smov %s708_s18 }
 0x107   :  { %14 = sbr.rel (!%p12_p5) target bundleno = 2 (0x2), region = 74 }

</bundles_post_ra>
